<compile_context>
chip_gen: v6e
topology: v6e:2x2x1
jax: 0.10.0
libtpu: 0.0.40
codegen_flags: <defaults>
</compile_context>

<pallas_src>
import math

import jax
import jax.numpy as jnp
from jax.experimental import pallas as pl
from jax.experimental.pallas import tpu as pltpu


def _round_up(x, m):
    return ((x + m - 1) // m) * m


# ---------------------------------------------------------------------------
# Pallas kernel: fused masked attention + relation head
#
# For a tile of TQ query edges i (with batch row row(i)):
#   q_proj = q_raw @ (Wq^T/sqrt(dh)) + bq/sqrt(dh)               (TQ, dh)
#   s[i,j] = <q_proj[i], k_proj[j]> + mask_bias[j]               (TQ, n*l)
#   s      = where(key_row[j] == row(i), s, -1e30)
#   e      = exp(s - max)  ;  inv = 1 / sum(e)      (deferred normalization)
#   att[i] = (e @ v_flat) * inv                                  (TQ, dx)
#   logit  = q_raw @ Wrel_q^T + att @ Wrel_att^T + brel          (TQ, 128-pad)
# ---------------------------------------------------------------------------
def _attn_rel_kernel(rows_ref, q_ref, wq_ref, bq_ref, kt_ref, v_ref,
                     krow_ref, mbias_ref, wrq_ref, wra_ref, brel_ref, o_ref):
    q_raw = q_ref[...]                                            # (TQ, 2dh) bf16

    # q projection (1/sqrt(dh) already folded into Wq / bq in the wrapper)
    q_proj = (jnp.dot(q_raw, wq_ref[...], preferred_element_type=jnp.float32)
              + bq_ref[...])                                      # (TQ, dh) f32

    # scores against all flattened keys (bf16 MXU, f32 accumulate)
    s = jnp.dot(q_proj.astype(jnp.bfloat16), kt_ref[...],
                preferred_element_type=jnp.float32)               # (TQ, nl) f32
    # resident additive padding-mask bias + batch-row equality select
    s = s + mbias_ref[...]
    s = jnp.where(krow_ref[...] == rows_ref[...], s, jnp.float32(-1e30))

    # numerically stable softmax with deferred normalization (EUP reciprocal)
    m = jnp.max(s, axis=-1, keepdims=True)
    e = jnp.exp(s - m)                                            # (TQ, nl) f32
    inv = pl.reciprocal(jnp.sum(e, axis=-1, keepdims=True), approx=True)

    att = jnp.dot(e.astype(jnp.bfloat16), v_ref[...],
                  preferred_element_type=jnp.float32) * inv       # (TQ, dx) f32

    # relation head; output lanes zero-padded to a multiple of 128 (lane-dense)
    logit = (jnp.dot(q_raw, wrq_ref[...], preferred_element_type=jnp.float32)
             + jnp.dot(att.astype(jnp.bfloat16), wra_ref[...],
                       preferred_element_type=jnp.float32)
             + brel_ref[...])
    o_ref[...] = logit.astype(o_ref.dtype)


# ---------------------------------------------------------------------------
# Wrapper: AttentionModel.attention(...) + self.rel(cat([q, attn], -1))
# ---------------------------------------------------------------------------
def attention_rel_logits(rows, q_raw, k_proj, v, msk, wq, bq, wrel, brel,
                         *, block_q=256):
    """rows  : (M,)   int  batch row of each query (== idx, repeat_interleave map)
       q_raw : (M, 2*dh)   concat([h_grp[idx, src], h_grp[idx, dst]])
       k_proj: (n, l, dh)  self.k(h_grp)
       v     : (n, l, dx)  z_grp
       msk   : (n, l)      1.0 = attend, 0.0 = masked
       returns (M, n_typ) logits (float32)."""
    M, d2 = q_raw.shape
    n, l, dh = k_proj.shape
    dx = v.shape[-1]
    n_typ = brel.shape[0]
    nl = n * l
    n_typ_p = _round_up(n_typ, 128)          # lane-dense output (unmasked vst)

    # Query tile: multiple of 8 sublanes, capped so the grid has >= 2 steps
    # (keeps both v7x TensorCores busy via the "parallel" axis).
    tq = max(8, min(block_q, _round_up((M + 1) // 2, 8)))
    mp = _round_up(M, tq)
    pad = mp - M

    rows_p = jnp.pad(rows.astype(jnp.int32), (0, pad)).reshape(mp, 1)
    q_p = jnp.pad(q_raw, ((0, pad), (0, 0))).astype(jnp.bfloat16)

    scale = 1.0 / math.sqrt(dh)
    # lane-dense bf16 MXU operands; 1/sqrt(dh) folded into Wq / bq
    wq_t = (wq.T * scale).astype(jnp.bfloat16)                    # (2dh, dh)
    bq_r = (bq * scale).reshape(1, dh).astype(jnp.float32)
    k_t = k_proj.reshape(nl, dh).T.astype(jnp.bfloat16)           # (dh, n*l)
    v_flat = v.reshape(nl, dx).astype(jnp.bfloat16)               # (n*l, dx)
    key_row = (jnp.arange(nl, dtype=jnp.int32) // l).reshape(1, nl)
    mask_bias = jnp.where(msk.reshape(1, nl) > 0.5,
                          0.0, -1e30).astype(jnp.float32)         # (1, n*l)
    # rel head weights, zero-padded to 128 output lanes
    wrq_t = jnp.pad(wrel[:, :d2].T,
                    ((0, 0), (0, n_typ_p - n_typ))).astype(jnp.bfloat16)
    wra_t = jnp.pad(wrel[:, d2:].T,
                    ((0, 0), (0, n_typ_p - n_typ))).astype(jnp.bfloat16)
    brel_r = jnp.pad(brel, (0, n_typ_p - n_typ)).reshape(1, n_typ_p) \
                .astype(jnp.float32)

    grid = (mp // tq,)
    per_tile = lambda i: (i, 0)     # blocks that advance with the query tile
    resident = lambda i: (0, 0)     # weights / keys / values stay resident

    flops = 2 * mp * (d2 * dh + dh * nl + nl * dx + d2 * n_typ_p + dx * n_typ_p)
    bytes_accessed = (mp * (4 + 2 * d2 + 4 * n_typ_p)
                      + 2 * (d2 * dh + dh * nl + nl * dx + (d2 + dx) * n_typ_p)
                      + 4 * (dh + 2 * nl + n_typ_p))

    # VMEM budget: double-buffered per-tile blocks + resident operands + the
    # (tq, nl) f32 score slab; capped at 64 MiB so it also fits v7x.
    resident_bytes = (2 * (d2 * dh + dh * nl + nl * dx + (d2 + dx) * n_typ_p)
                      + 4 * (dh + 2 * nl + n_typ_p))
    tile_bytes = tq * (4 + 2 * d2 + 4 * n_typ_p) + 4 * tq * nl
    vmem_limit = int(min(64 * 1024 * 1024,
                         max(32 * 1024 * 1024,
                             2 * (resident_bytes + tile_bytes) + (4 << 20))))

    logit_p = pl.pallas_call(
        _attn_rel_kernel,
        out_shape=jax.ShapeDtypeStruct((mp, n_typ_p), jnp.float32),
        grid_spec=pltpu.PrefetchScalarGridSpec(
            num_scalar_prefetch=0,
            grid=grid,
            in_specs=[
                pl.BlockSpec((tq, 1), per_tile),         # rows (query batch row)
                pl.BlockSpec((tq, d2), per_tile),        # q_raw (bf16)
                pl.BlockSpec((d2, dh), resident),        # Wq^T / sqrt(dh)
                pl.BlockSpec((1, dh), resident),         # bq / sqrt(dh)
                pl.BlockSpec((dh, nl), resident),        # K^T (projected keys)
                pl.BlockSpec((nl, dx), resident),        # V   (z_grp)
                pl.BlockSpec((1, nl), resident),         # key batch-row ids
                pl.BlockSpec((1, nl), resident),         # additive mask bias
                pl.BlockSpec((d2, n_typ_p), resident),   # Wrel_q^T  (128-pad)
                pl.BlockSpec((dx, n_typ_p), resident),   # Wrel_att^T (128-pad)
                pl.BlockSpec((1, n_typ_p), resident),    # brel (128-pad)
            ],
            out_specs=pl.BlockSpec((tq, n_typ_p), per_tile),
        ),
        compiler_params=pltpu.CompilerParams(
            dimension_semantics=("parallel",),
            vmem_limit_bytes=vmem_limit,
        ),
        cost_estimate=pl.CostEstimate(
            flops=flops, transcendentals=mp * (nl + 1),
            bytes_accessed=bytes_accessed),
    )(rows_p, q_p, wq_t, bq_r, k_t, v_flat, key_row, mask_bias,
      wrq_t, wra_t, brel_r)

    return logit_p[:M, :n_typ]


# ---------------------------------------------------------------------------
# forward() glue (metrics, loss) mirroring AttentionModel.forward
# ---------------------------------------------------------------------------
def attention_model_forward(params, h_grp, z_grp, msk, idx, src, dst, typ,
                            *, training=False, block_q=256):
    n = h_grp.shape[0]
    # q = cat([h_grp[idx, src], h_grp[idx, dst]], -1)
    q_raw = jnp.concatenate([h_grp[idx, src], h_grp[idx, dst]], axis=-1)
    # self.k(h_grp) computed once; reused by every query tile inside the kernel
    k_proj = jnp.einsum("nld,ed->nle", h_grp, params["wk"]) + params["bk"]

    logit = attention_rel_logits(idx, q_raw, k_proj, z_grp, msk,
                                 params["wq"], params["bq"],
                                 params["wrel"], params["brel"],
                                 block_q=block_q)

    gt = logit > 0.0
    eq = gt == (typ > 0)
    d = {"acc": eq.astype(jnp.float32).mean()}
    em = jax.ops.segment_min(eq.all(axis=1).astype(jnp.int32), idx, num_segments=n)
    d["emr"] = em.astype(jnp.float32).mean()
    if training:
        x = logit
        z = typ.astype(jnp.float32)
        nll = jnp.sum(jnp.maximum(x, 0.0) - x * z
                      + jnp.log1p(jnp.exp(-jnp.abs(x)))) / n
        d["loss"] = d["nll"] = nll
    return d, {"em": em, "typ_true": typ, "typ_pred": gt, "logit": logit}


# plain-JAX f32 reference of attention + rel head (mirrors the PyTorch math)
def _reference_logits(params, h_grp, z_grp, msk, idx, src, dst):
    dh = h_grp.shape[-1]
    q_raw = jnp.concatenate([h_grp[idx, src], h_grp[idx, dst]], axis=-1)
    q_proj = q_raw @ params["wq"].T + params["bq"]
    k_proj = jnp.einsum("nld,ed->nle", h_grp, params["wk"]) + params["bk"]
    s = jnp.einsum("mld,md->ml", k_proj[idx], q_proj) / math.sqrt(dh)
    s = jnp.where(msk[idx] > 0.5, s, -jnp.inf)
    p = jax.nn.softmax(s, axis=-1)
    att = jnp.einsum("ml,mld->md", p, z_grp[idx])
    cat = jnp.concatenate([q_raw, att], axis=-1)
    return cat @ params["wrel"].T + params["brel"]


if __name__ == "__main__":
    key = jax.random.PRNGKey(0)
    (k_h, k_tok, k_wq, k_bq, k_wk, k_wrel, k_mem, k_grp, k_p2g,
     k_src, k_dst, k_typ) = jax.random.split(key, 12)

    # small shapes: n=4 groups, l=8 positions, seq_inp=16, seq_hidden=32, 8 types
    n, l = 4, 8
    dx, dh = 16, 32
    n_typ = 8
    n_tok, n_mem, n_concept = 20, 12, 6

    params = {
        "tok_emb": 0.1 * jax.random.normal(k_tok, (n_tok, dx), jnp.float32),
        "wq": jax.random.normal(k_wq, (dh, 2 * dh), jnp.float32) / math.sqrt(2 * dh),
        "bq": 0.01 * jax.random.normal(k_bq, (dh,), jnp.float32),
        "wk": jax.random.normal(k_wk, (dh, dh), jnp.float32) / math.sqrt(dh),
        "bk": jnp.zeros((dh,), jnp.float32),
        "wrel": jax.random.normal(k_wrel, (n_typ, 2 * dh + dx), jnp.float32)
                / math.sqrt(2 * dh + dx),
        "brel": jnp.zeros((n_typ,), jnp.float32),
    }
    # TODO(synk): self.bn (BatchNorm1d) is a parameter of the module but unused
    # in forward(); not instantiated here.

    # --- inputs ------------------------------------------------------------
    # TODO(synk): h_grp should be the bidirectional LSTM/GRU encoding of the
    # packed tag-embedding sequences; the sequential recurrence / PackedSequence
    # plumbing has no clean Pallas equivalent, so the demo feeds the encoder
    # output tensor directly.
    h_grp = jax.random.normal(k_h, (n, l, dh), jnp.float32)

    lens = jnp.array([8, 6, 5, 7], jnp.int32)
    msk = (jnp.arange(l)[None, :] < lens[:, None]).astype(jnp.float32)   # (n, l)

    # z_grp = scatter_sum(tok_encoder(mem), grp, 0)[pos2grp]   (plain-JAX glue)
    mem = jax.random.randint(k_mem, (n_mem,), 0, n_tok)
    grp = jax.random.randint(k_grp, (n_mem,), 0, n_concept)
    pos2grp = jax.random.randint(k_p2g, (n, l), 0, n_concept)
    tok_emb = params["tok_emb"][mem]                                      # (n_mem, dx)
    z_pool = jax.ops.segment_sum(tok_emb, grp, num_segments=n_concept)    # (n_concept, dx)
    z_grp = z_pool[pos2grp]                                               # (n, l, dx)

    # edges: 6 per group, grouped by row (== repeat_interleave(nq) ordering)
    per_row = 6
    M = n * per_row
    idx = jnp.repeat(jnp.arange(n, dtype=jnp.int32), per_row)             # (M,)
    src = jax.random.randint(k_src, (M,), 0, l)
    dst = jax.random.randint(k_dst, (M,), 0, l)
    typ = jax.random.randint(k_typ, (M, n_typ), 0, 2)

    # --- eval-mode forward (default block_q -> tq=16, grid of 2 query tiles) --
    d_eval, aux = attention_model_forward(params, h_grp, z_grp, msk,
                                          idx, src, dst, typ,
                                          training=False)
    logit = jax.block_until_ready(aux["logit"])
    assert logit.shape == (M, n_typ)

    # bf16 MXU operands -> compare against the f32 reference with a bf16-level
    # tolerance (logits are O(1), bf16 matmul error is O(1e-2))
    ref = _reference_logits(params, h_grp, z_grp, msk, idx, src, dst)
    assert jnp.allclose(logit, ref, atol=5e-2, rtol=5e-2), "mismatch vs reference"
    assert jnp.isfinite(d_eval["acc"]) and jnp.isfinite(d_eval["emr"])

    # --- training-mode forward (block_q=8 -> grid of 3 tiles, adds BCE loss) --
    d_train, _ = attention_model_forward(params, h_grp, z_grp, msk,
                                         idx, src, dst, typ,
                                         training=True, block_q=8)
    loss = jax.block_until_ready(d_train["loss"])
    assert jnp.isfinite(loss)

    print("KERNEL_OK")
</pallas_src>

<mosaic_0001>
module attributes {stable_mosaic.version = 11 : i64} {
  func.func @_attn_rel_kernel(%arg0: i32, %arg1: memref<16x1xi32, #tpu.memory_space<vmem>>, %arg2: memref<16x64xbf16, #tpu.memory_space<vmem>>, %arg3: memref<64x32xbf16, #tpu.memory_space<vmem>>, %arg4: memref<1x32xf32, #tpu.memory_space<vmem>>, %arg5: memref<32x32xbf16, #tpu.memory_space<vmem>>, %arg6: memref<32x16xbf16, #tpu.memory_space<vmem>>, %arg7: memref<1x32xi32, #tpu.memory_space<vmem>>, %arg8: memref<1x32xf32, #tpu.memory_space<vmem>>, %arg9: memref<64x128xbf16, #tpu.memory_space<vmem>>, %arg10: memref<16x128xbf16, #tpu.memory_space<vmem>>, %arg11: memref<1x128xf32, #tpu.memory_space<vmem>>, %arg12: memref<16x128xf32, #tpu.memory_space<vmem>>) attributes {dimension_semantics = [#tpu.dimension_semantics<parallel>], iteration_bounds = array<i64: 2>, scalar_prefetch = 0 : i64, scratch_operands = 0 : i64, tpu.core_type = #tpu.core_type<tc>, window_params = [{transform_indices = @transform_0, window_bounds = array<i64: 16, 1>}, {transform_indices = @transform_1, window_bounds = array<i64: 16, 64>}, {pipeline_mode = #tpu.pipeline_mode<synchronous>, transform_indices = @transform_2, window_bounds = array<i64: 64, 32>}, {pipeline_mode = #tpu.pipeline_mode<synchronous>, transform_indices = @transform_3, window_bounds = array<i64: 1, 32>}, {pipeline_mode = #tpu.pipeline_mode<synchronous>, transform_indices = @transform_4, window_bounds = array<i64: 32, 32>}, {pipeline_mode = #tpu.pipeline_mode<synchronous>, transform_indices = @transform_5, window_bounds = array<i64: 32, 16>}, {pipeline_mode = #tpu.pipeline_mode<synchronous>, transform_indices = @transform_6, window_bounds = array<i64: 1, 32>}, {pipeline_mode = #tpu.pipeline_mode<synchronous>, transform_indices = @transform_7, window_bounds = array<i64: 1, 32>}, {pipeline_mode = #tpu.pipeline_mode<synchronous>, transform_indices = @transform_8, window_bounds = array<i64: 64, 128>}, {pipeline_mode = #tpu.pipeline_mode<synchronous>, transform_indices = @transform_9, window_bounds = array<i64: 16, 128>}, {pipeline_mode = #tpu.pipeline_mode<synchronous>, transform_indices = @transform_10, window_bounds = array<i64: 1, 128>}, {transform_indices = @transform_11, window_bounds = array<i64: 16, 128>}]} {
    %c0 = arith.constant 0 : index
    %c0_0 = arith.constant 0 : index
    %0 = vector.load %arg2[%c0, %c0_0] : memref<16x64xbf16, #tpu.memory_space<vmem>>, vector<16x64xbf16>
    %c0_1 = arith.constant 0 : index
    %c0_2 = arith.constant 0 : index
    %1 = vector.load %arg3[%c0_1, %c0_2] : memref<64x32xbf16, #tpu.memory_space<vmem>>, vector<64x32xbf16>
    %cst = arith.constant dense<0.000000e+00> : vector<16x32xf32>
    %2 = tpu.matmul %0, %1, %cst {dimension_numbers = #tpu.dot_dimension_numbers<[1], [0], [0], [1], [0, 0, 1, 1], [], []>} : vector<16x64xbf16>, vector<64x32xbf16>, vector<16x32xf32> -> vector<16x32xf32>
    %c0_3 = arith.constant 0 : index
    %c0_4 = arith.constant 0 : index
    %3 = vector.load %arg4[%c0_3, %c0_4] : memref<1x32xf32, #tpu.memory_space<vmem>>, vector<1x32xf32>
    %4 = vector.broadcast %3 : vector<1x32xf32> to vector<16x32xf32>
    %5 = arith.addf %2, %4 : vector<16x32xf32>
    %6 = arith.truncf %5 : vector<16x32xf32> to vector<16x32xbf16>
    %c0_5 = arith.constant 0 : index
    %c0_6 = arith.constant 0 : index
    %7 = vector.load %arg5[%c0_5, %c0_6] : memref<32x32xbf16, #tpu.memory_space<vmem>>, vector<32x32xbf16>
    %cst_7 = arith.constant dense<0.000000e+00> : vector<16x32xf32>
    %8 = tpu.matmul %6, %7, %cst_7 {dimension_numbers = #tpu.dot_dimension_numbers<[1], [0], [0], [1], [0, 0, 1, 1], [], []>} : vector<16x32xbf16>, vector<32x32xbf16>, vector<16x32xf32> -> vector<16x32xf32>
    %c0_8 = arith.constant 0 : index
    %c0_9 = arith.constant 0 : index
    %9 = vector.load %arg8[%c0_8, %c0_9] : memref<1x32xf32, #tpu.memory_space<vmem>>, vector<1x32xf32>
    %10 = vector.broadcast %9 : vector<1x32xf32> to vector<16x32xf32>
    %11 = arith.addf %8, %10 : vector<16x32xf32>
    %c0_10 = arith.constant 0 : index
    %c0_11 = arith.constant 0 : index
    %12 = vector.load %arg7[%c0_10, %c0_11] : memref<1x32xi32, #tpu.memory_space<vmem>>, vector<1x32xi32>
    %c0_12 = arith.constant 0 : index
    %c0_13 = arith.constant 0 : index
    %13 = vector.load %arg1[%c0_12, %c0_13] : memref<16x1xi32, #tpu.memory_space<vmem>>, vector<16x1xi32>
    %14 = vector.broadcast %12 : vector<1x32xi32> to vector<16x32xi32>
    %15 = vector.broadcast %13 : vector<16x1xi32> to vector<16x32xi32>
    %16 = arith.cmpi eq, %14, %15 : vector<16x32xi32>
    %cst_14 = arith.constant -1.000000e+30 : f32
    %17 = vector.broadcast %cst_14 : f32 to vector<16x32xf32>
    %18 = arith.select %16, %11, %17 : vector<16x32xi1>, vector<16x32xf32>
    %cst_15 = arith.constant dense<0xFF800000> : vector<16xf32>
    %19 = vector.multi_reduction <maximumf>, %18, %cst_15 [1] : vector<16x32xf32> to vector<16xf32>
    %20 = vector.shape_cast %19 : vector<16xf32> to vector<16x1xf32>
    %21 = vector.broadcast %20 : vector<16x1xf32> to vector<16x32xf32>
    %22 = arith.subf %18, %21 : vector<16x32xf32>
    %23 = math.exp %22 : vector<16x32xf32>
    %cst_16 = arith.constant dense<0.000000e+00> : vector<16xf32>
    %24 = vector.multi_reduction <add>, %23, %cst_16 [1] : vector<16x32xf32> to vector<16xf32>
    %25 = vector.shape_cast %24 : vector<16xf32> to vector<16x1xf32>
    %26 = tpu.reciprocal %25 {approx = true} : vector<16x1xf32> -> vector<16x1xf32>
    %27 = arith.truncf %23 : vector<16x32xf32> to vector<16x32xbf16>
    %c0_17 = arith.constant 0 : index
    %c0_18 = arith.constant 0 : index
    %28 = vector.load %arg6[%c0_17, %c0_18] : memref<32x16xbf16, #tpu.memory_space<vmem>>, vector<32x16xbf16>
    %cst_19 = arith.constant dense<0.000000e+00> : vector<16x16xf32>
    %29 = tpu.matmul %27, %28, %cst_19 {dimension_numbers = #tpu.dot_dimension_numbers<[1], [0], [0], [1], [0, 0, 1, 1], [], []>} : vector<16x32xbf16>, vector<32x16xbf16>, vector<16x16xf32> -> vector<16x16xf32>
    %30 = vector.broadcast %26 : vector<16x1xf32> to vector<16x16xf32>
    %31 = arith.mulf %29, %30 : vector<16x16xf32>
    %c0_20 = arith.constant 0 : index
    %c0_21 = arith.constant 0 : index
    %32 = vector.load %arg9[%c0_20, %c0_21] : memref<64x128xbf16, #tpu.memory_space<vmem>>, vector<64x128xbf16>
    %cst_22 = arith.constant dense<0.000000e+00> : vector<16x128xf32>
    %33 = tpu.matmul %0, %32, %cst_22 {dimension_numbers = #tpu.dot_dimension_numbers<[1], [0], [0], [1], [0, 0, 1, 1], [], []>} : vector<16x64xbf16>, vector<64x128xbf16>, vector<16x128xf32> -> vector<16x128xf32>
    %34 = arith.truncf %31 : vector<16x16xf32> to vector<16x16xbf16>
    %c0_23 = arith.constant 0 : index
    %c0_24 = arith.constant 0 : index
    %35 = vector.load %arg10[%c0_23, %c0_24] : memref<16x128xbf16, #tpu.memory_space<vmem>>, vector<16x128xbf16>
    %cst_25 = arith.constant dense<0.000000e+00> : vector<16x128xf32>
    %36 = tpu.matmul %34, %35, %cst_25 {dimension_numbers = #tpu.dot_dimension_numbers<[1], [0], [0], [1], [0, 0, 1, 1], [], []>} : vector<16x16xbf16>, vector<16x128xbf16>, vector<16x128xf32> -> vector<16x128xf32>
    %37 = arith.addf %33, %36 : vector<16x128xf32>
    %c0_26 = arith.constant 0 : index
    %c0_27 = arith.constant 0 : index
    %38 = vector.load %arg11[%c0_26, %c0_27] : memref<1x128xf32, #tpu.memory_space<vmem>>, vector<1x128xf32>
    %39 = vector.broadcast %38 : vector<1x128xf32> to vector<16x128xf32>
    %40 = arith.addf %37, %39 : vector<16x128xf32>
    %c0_28 = arith.constant 0 : index
    %c0_29 = arith.constant 0 : index
    %41 = vector.load %arg12[%c0_28, %c0_29] : memref<16x128xf32, #tpu.memory_space<vmem>>, vector<16x128xf32>
    tpu.vector_store %arg12[%c0_28, %c0_29], %40 {strides = array<i32>} : memref<16x128xf32, #tpu.memory_space<vmem>>, vector<16x128xf32>,
    return
  }
  func.func @transform_0(%arg0: i32) -> (i32, i32) {
    %c0_i32 = arith.constant 0 : i32
    %c0_i32_0 = arith.constant 0 : i32
    return %arg0, %c0_i32 : i32, i32
  }
  func.func @transform_1(%arg0: i32) -> (i32, i32) {
    %c0_i32 = arith.constant 0 : i32
    %c0_i32_0 = arith.constant 0 : i32
    return %arg0, %c0_i32 : i32, i32
  }
  func.func @transform_2(%arg0: i32) -> (i32, i32) {
    %c0_i32 = arith.constant 0 : i32
    %c0_i32_0 = arith.constant 0 : i32
    %c0_i32_1 = arith.constant 0 : i32
    return %c0_i32, %c0_i32_0 : i32, i32
  }
  func.func @transform_3(%arg0: i32) -> (i32, i32) {
    %c0_i32 = arith.constant 0 : i32
    %c0_i32_0 = arith.constant 0 : i32
    %c0_i32_1 = arith.constant 0 : i32
    return %c0_i32, %c0_i32_0 : i32, i32
  }
  func.func @transform_4(%arg0: i32) -> (i32, i32) {
    %c0_i32 = arith.constant 0 : i32
    %c0_i32_0 = arith.constant 0 : i32
    %c0_i32_1 = arith.constant 0 : i32
    return %c0_i32, %c0_i32_0 : i32, i32
  }
  func.func @transform_5(%arg0: i32) -> (i32, i32) {
    %c0_i32 = arith.constant 0 : i32
    %c0_i32_0 = arith.constant 0 : i32
    %c0_i32_1 = arith.constant 0 : i32
    return %c0_i32, %c0_i32_0 : i32, i32
  }
  func.func @transform_6(%arg0: i32) -> (i32, i32) {
    %c0_i32 = arith.constant 0 : i32
    %c0_i32_0 = arith.constant 0 : i32
    %c0_i32_1 = arith.constant 0 : i32
    return %c0_i32, %c0_i32_0 : i32, i32
  }
  func.func @transform_7(%arg0: i32) -> (i32, i32) {
    %c0_i32 = arith.constant 0 : i32
    %c0_i32_0 = arith.constant 0 : i32
    %c0_i32_1 = arith.constant 0 : i32
    return %c0_i32, %c0_i32_0 : i32, i32
  }
  func.func @transform_8(%arg0: i32) -> (i32, i32) {
    %c0_i32 = arith.constant 0 : i32
    %c0_i32_0 = arith.constant 0 : i32
    %c0_i32_1 = arith.constant 0 : i32
    return %c0_i32, %c0_i32_0 : i32, i32
  }
  func.func @transform_9(%arg0: i32) -> (i32, i32) {
    %c0_i32 = arith.constant 0 : i32
    %c0_i32_0 = arith.constant 0 : i32
    %c0_i32_1 = arith.constant 0 : i32
    return %c0_i32, %c0_i32_0 : i32, i32
  }
  func.func @transform_10(%arg0: i32) -> (i32, i32) {
    %c0_i32 = arith.constant 0 : i32
    %c0_i32_0 = arith.constant 0 : i32
    %c0_i32_1 = arith.constant 0 : i32
    return %c0_i32, %c0_i32_0 : i32, i32
  }
  func.func @transform_11(%arg0: i32) -> (i32, i32) {
    %c0_i32 = arith.constant 0 : i32
    %c0_i32_0 = arith.constant 0 : i32
    return %arg0, %c0_i32 : i32, i32
  }
}

</mosaic_0001>

<bundles_post_ra>
// kernel: tpu_custom_call.1
= control target key start
LH: loop header
LB: loop body
LE: loop exit
PB: predicated region body
PF: predicated region fallthrough
CT: control target
= control target key end

     0   :  { %s1384_s0 = inlined_call_operand.vmem [shape: s32[32,1], index: 0, kind: input, shape index: {}]   ;;  %s1385_s1 = inlined_call_operand.vmem [shape: bf16[32,64], index: 1, kind: input, shape index: {}]   ;;  %s1386_s2 = inlined_call_operand.vmem [shape: bf16[64,32], index: 2, kind: input, shape index: {}]   ;;  %s1387_s3 = inlined_call_operand.vmem [shape: f32[1,32], index: 3, kind: input, shape index: {}]   ;;  %s1388_s4 = inlined_call_operand.vmem [shape: bf16[32,32], index: 4, kind: input, shape index: {}]   ;;  %s1389_s5 = inlined_call_operand.vmem [shape: bf16[32,16], index: 5, kind: input, shape index: {}]   ;;  %s1390_s6 = inlined_call_operand.vmem [shape: s32[1,32], index: 6, kind: input, shape index: {}]   ;;  %s1391_s7 = inlined_call_operand.vmem [shape: f32[1,32], index: 7, kind: input, shape index: {}]   ;;  %s1392_s8 = inlined_call_operand.vmem [shape: bf16[64,128], index: 8, kind: input, shape index: {}]   ;;  %s1393_s9 = inlined_call_operand.vmem [shape: bf16[16,128], index: 9, kind: input, shape index: {}]   ;;  %s1394_s10 = inlined_call_operand.vmem [shape: f32[1,128], index: 10, kind: input, shape index: {}]   ;;  %s1395_s11 = inlined_call_operand.hbm [shape: f32[32,128], index: 11, kind: output, shape index: {}]  }
   0x1   :  { %1396 = sst [smem:[#allocation5_spill]] %s1384_s0 }
   0x2   :  { %16 = vsyncpa [#allocation3], 0 }
   0x3   :  { %18 = vsyncpa [#allocation3 + $0x1], 0  ;;  %s1194_s17 = smov 0   ;;  %s1196_s18 = smov 0  }
   0x4   :  { %s1198_s19 = smov 0   ;;  %s1200_s20 = smov 0  }
   0x5 LB: > { %s1215_s21 = sadd.s32 4294967295, %s1126_s20   ;;  %s897_s22 = sadd.s32 4294967294, %s1126_s20   ;;  %s1126_s20 = sphi %s1200_s20, %s1403_s20   ;;  %s1122_s19 = sphi %s1198_s19, %s1402_s19   ;;  %s1118_s18 = sphi %s1196_s18, %s1401_s18   ;;  %s1114_s17 = sphi %s1194_s17, %s1400_s17  }
   0x6   : > { %s1219_s23 = sadd.s32 1, %s1126_s20   ;;  %s272_s24 = sadd.s32 1, %s1122_s19 }
   0x7   : > { %s269_s25 = ssub.s32 %s1126_s20, %s1219_s23  ;;  %p282_p0 = scmp.ne.s32.totalorder %s1122_s19, %s1118_s18 }
   0x8   : > { %p270_p1 = scmp.eq.s32.totalorder %s269_s25, 0  ;;  %p283_p2 = scmp.eq.s32.totalorder %s1215_s21, 1 }
   0x9   : > { %p288_p3 = scmp.ne.s32.totalorder %s1118_s18, %s1114_s17  ;;  %p289_p4 = scmp.eq.s32.totalorder %s897_s22, 1 }
   0xa   : > { %s1230_s26 = scalar_select %p270_p1, %s1122_s19, %s272_s24  }
   0xb   : > { %p1232_p5 = por %p283_p2, %p282_p0  ;;  %p1236_p6 = por %p289_p4, %p288_p3 }
   0xc   : > { %p900_p7 = scmp.ge.s32.totalorder %s1126_s20, 1  ;;  %p352_p8 = scmp.lt.s32.totalorder %s1126_s20, 3 }
   0xe   : > { %p353_p9 = pnand %p900_p7, %p352_p8 }
   0xf   : > { %s902_s14 = sshll.u32 (!%p353_p9), %s1215_s21, 1  ;;  %s1399_s0 = sld [smem:[#allocation5_spill]] (!%p353_p9) }
  0x10   : > { %356 = sbr.rel (%p353_p9) target bundleno = 1014 (0x3f6), region = 64  ;;  %p398_p10 = scmp.lt.s32.totalorder (!%p353_p9), %s902_s14, 3 }
  0x11   : > { %s394_s12 = sand.u32 (!%p353_p9), 1, %s1118_s18  }
  0x12   : > { %s901_s13 = sshll.u32 (!%p353_p9), %s394_s12, 4 }
  0x13   : > { %s396_s16 = scalar_lea.vmem (!%p353_p9), [#allocation2], %s901_s13 }
  0x15   : > { %v1044_v0 = vld [vmem:[%s1386_s2 + $0x18] sm:$0xff]   ;;  %v1128_v1 = vmov 0.0   ;;  %v1045_v2 = vld [vmem:[%s1386_s2 + $0x10] sm:$0xff]   ;;  %vm1129_vm0 = vmmov 0   ;;  %v1046_v3 = vld [vmem:[%s1386_s2 + $0x8] sm:$0xff]   ;;  %s1405_s14 = smov (!%p398_p10, %s902_s14), 3 }
  0x16   : > { %953 = vmatprep.subr.bf16.mxu0 %v1128_v1  ;;  %965 = vmatprep.subr.bf16.mxu1 %v1128_v1  ;;  %s905_s22 = sshll.u32 %s1405_s14, 2  ;;  %v1047_v4 = vld [vmem:[%s1386_s2] sm:$0xff]   ;;  %vm457_vm1 = vcmask 523264   ;;  %v1049_v6 = vld [vmem:[%s1388_s4 + $0x8] sm:$0xff]   ;;  %s903_s24 = sshll.u32 %s1405_s14, 3  ;;  %v1130_v8 = vmov 0  }
  0x17   : > { %954 = vmatpush3.bf16.msra.mxu0 %v1044_v0  ;;  %961 = vmatprep.mubr.msk.bf16.mxu0 %vm1129_vm0, %v1128_v1  ;;  %s407_s29 = scalar_lea.vmem %s1385_s1, %s905_s22  ;;  %v1050_v7 = vld [vmem:[%s1388_s4] sm:$0xff]   ;;  %s401_s30 = scalar_lea.vmem %s1399_s0, %s903_s24  ;;  %vm526_vm2 = vcmask 261120   ;;  %v1051_v33 = vld [vmem:[%s1389_s5 + $0x8] sm:$0xff]   ;;  %v1053_v46 = vld [vmem:[%s1392_s8 + $0x18] sm:$0xff]   ;;  %vm688_vm5 = vcmask 130048  }
  0x18   : > { %955 = vmatprep.subr.bf16.mxu0 %v1128_v1  ;;  %969 = vmatprep.mubr.msk.bf16.mxu1 %vm1129_vm0, %v1128_v1  ;;  %v1267_v5 = vld [vmem:[%s407_s29] sm:$0xff]   ;;  %v573_v10 = vld [vmem:[%s401_s30 + $0x8] sm:$0xff]  ;;  %v1054_v47 = vld [vmem:[%s1392_s8 + $0x10] sm:$0xff]   ;;  %s823_s22 = sshll.u32 %s396_s16, 4  ;;  %s934_s24 = sshll.u32 %s1215_s21, 8  ;;  %s1337_s22 = int_to_ptr.vmem [resolvable:$true] %s823_s22 }
  0x19   : > { %966 = vmatpush3.bf16.msra.mxu1 %v1049_v6  ;;  %1043 = vset.pattern.permute.xlu0 %v1130_v8  ;;  %v572_v9 = vld [vmem:[%s401_s30] sm:$0xff]  ;;  %v1055_v48 = vld [vmem:[%s1392_s8 + $0x8] sm:$0xff]   ;;  %s1342_s30 = scalar_lea.hbm %s1395_s11, %s934_s24  ;;  %s1344_s14 = scalar_lea.sflag [#allocation3], %s394_s12 }
  0x1a   : > { %967 = vmatprep.subr.bf16.mxu1 %v1128_v1  ;;  %579 = vperm.xlu0 %1043, %v572_v9   ;;  %v906_v12 = vld [vmem:[%s1387_s3] ss:$0 sm:$0xff]  ;;  %s1066_s13 = scalar_lea.vmem %s1337_s22, 256  ;;  %s1131_s21 = smov [#allocation2]  }
  0x1b   : > { %956 = vmatpush3.bf16.msra.mxu0 %v1045_v2  ;;  %v917_v19 = vld [vmem:[%s1390_s6] ss:$0 sm:$0xff]  ;;  %p1067_p11 = scmp.ne.s32.totalorder %s1337_s22, %s1066_s13  ;;  %s1070_s15 = sshll.u32 %s1131_s21, 4  ;;  %s1071_s15 = int_to_ptr.vmem [resolvable:$false] %s1070_s15 }
  0x1c   : > { %957 = vmatprep.subr.bf16.mxu0 %v1128_v1  ;;  %v913_v21 = vld [vmem:[%s1391_s7] ss:$0 sm:$0xff]  ;;  %s1072_s0 = scalar_lea.vmem %s1071_s15, 512  ;;  %p1073_p0 = scmp.lt.s32.totalorder %s1337_s22, %s1071_s15 }
  0x1d   : > { %968 = vmatpush3.bf16.msra.mxu1 %v1050_v7  ;;  %v1052_v34 = vld [vmem:[%s1389_s5] sm:$0xff]   ;;  %p1068_p12 = pnand %p1067_p11, %p1232_p5  ;;  %p1074_p1 = scmp.lt.s32.totalorder %s1072_s0, %s1066_s13 }
  0x1e   : > { %973 = vmatprep.subr.bf16.mxu1 %v1128_v1  ;;  %582 = vperm.xlu0 %1043, %v573_v10   ;;  %v1056_v49 = vld [vmem:[%s1392_s8] sm:$0xff]  }
  0x1f   : > { %958 = vmatpush3.bf16.msra.mxu0 %v1046_v3  ;;  %v1057_v50 = vld [vmem:[%s1393_s9] sm:$0xff]   ;;  %p1069_p13 = pneg %p1068_p12  ;;  %p1075_p2 = por %p1074_p1, %p1073_p0 }
  0x20   : > { %959 = vmatprep.subr.bf16.mxu0 %v1128_v1  ;;  %v928_v3 = vld [vmem:[%s1394_s10] ss:$0 sm:$0xff] }
  0x21   : > { %p1076_p3 = pnand %p1075_p2, %p1069_p13 }
  0x23   : > { %960 = vmatpush3.bf16.msra.mxu0 %v1047_v4 }
  0x24   : > { %981 = vmatprep.subr.bf16.mxu0 %v1128_v1 }
  0x26   : > { %962 = vmatmul.mubr.msk.bf16.vlgmr.msra.gmra.mxu0 %vm457_vm1, %v1267_v5 }
  0x27   : > { %983 = vmatprep.mubr.msk.bf16.mxu0 %vm1129_vm0, %v1128_v1  ;;  %982 = vmatpush3.bf16.msra.mxu0 %v1057_v50 }
  0x95   : > { %v580_v20 = vpop.permute.xlu0 %579 }
  0x96   : > { %vm584_vm3 = vcmp.eq.s32.totalorder %v917_v19, %v580_v20 }
  0x99   : > { %v583_v25 = vpop.permute.xlu0 %582 }
  0x9a   : > { %vm585_vm4 = vcmp.eq.s32.totalorder %v917_v19, %v583_v25 }
  0xe6   : > { %v495_v11 = vpop.f32.mrf.mxu0 }
  0xe7   : > { %v496_v15 = vadd.f32 %v906_v12, %v495_v11 }
  0xe8   : > { %v963_v13 = vpop.f32.mrf.mxu0 }
  0xea   : > { %v498_v14 = vpop.f32.mrf.mxu0 }
  0xeb   : > { %v499_v16 = vadd.f32 %v906_v12, %v498_v14 }
  0xec   : > { %v964_v17 = vpop.f32.mrf.mxu0 }
  0xed   : > { %v502_v18 = vpack.c.bf16 %v499_v16, %v496_v15 }
  0xef   : > { %970 = vmatmul.mubr.msk.bf16.vlgmr.msra.gmra.mxu1 %vm526_vm2, %v502_v18 }
  0xf0   : > { %977 = vmatprep.mubr.msk.bf16.mxu1 %vm1129_vm0, %v1128_v1  ;;  %974 = vmatpush3.bf16.msra.mxu1 %v1051_v33 }
  0xf1   : > { %975 = vmatprep.subr.bf16.mxu1 %v1128_v1 }
  0xf4   : > { %976 = vmatpush3.bf16.msra.mxu1 %v1052_v34 }
  0xf5   : > { %987 = vmatprep.subr.bf16.mxu1 %v1128_v1 }
 0x1af   : > { %v564_v22 = vpop.f32.mrf.mxu1 }
 0x1b0   : > { %v565_v23 = vadd.f32 %v913_v21, %v564_v22 }
 0x1b1   : > { %v971_v24 = vpop.f32.mrf.mxu1 }
 0x1b2   : > { %v586_v26 = vsel %vm584_vm3, %v565_v23, -1e+30 }
 0x1b3   : > { %v567_v27 = vpop.f32.mrf.mxu1  ;;  %v588_v28 = vsel %vm526_vm2, %v586_v26, -inf }
 0x1b4   : > { %v568_v29 = vadd.f32 %v913_v21, %v567_v27  ;;  %589 = vmax.xlane.f32.xlu1 %v588_v28 }
 0x1b5   : > { %v972_v30 = vpop.f32.mrf.mxu1 }
 0x1b6   : > { %v587_v31 = vsel %vm585_vm4, %v568_v29, -1e+30 }
 0x1b7   : > { %v591_v32 = vsel %vm526_vm2, %v587_v31, -inf }
 0x1b8   : > { %592 = vmax.xlane.f32.xlu1 %v591_v32 }
 0x23d   : > { %v590_v35 = vpop.xlane.xlu1 %589 }
 0x23e   : > { %v594_v36 = vsub.f32 %v586_v26, %v590_v35 }
 0x240   : > { %v596_v37 = vmul.f32 1.442695, %v594_v36 }
 0x241   : > { %v593_v38 = vpop.xlane.xlu1 %592 }
 0x242   : > { %1058 = vpow2.f32 %v596_v37  ;;  %v595_v39 = vsub.f32 %v587_v31, %v593_v38 }
 0x244   : > { %v598_v40 = vmul.f32 1.442695, %v595_v39 }
 0x246   : > { %1060 = vpow2.f32 %v598_v40 }
 0x24f   : > { %v1059_v41 = vpop.eup %1058 }
 0x250   : > { %v600_v42 = vsel %vm526_vm2, %v1059_v41, 0.0 }
 0x251   : > { %601 = vadd.xlane.f32.xlu0 %v600_v42 }
 0x253   : > { %v1061_v43 = vpop.eup %1060 }
 0x254   : > { %v603_v44 = vsel %vm526_vm2, %v1061_v43, 0.0  ;;  %v608_v45 = vpack.c.bf16 %v1061_v43, %v1059_v41 }
 0x255   : > { %604 = vadd.xlane.f32.xlu1 %v603_v44 }
 0x256   : > { %978 = vmatmul.mubr.msk.bf16.vlgmr.msra.gmra.mxu1 %vm526_vm2, %v608_v45 }
 0x257   : > { %995 = vmatprep.mubr.msk.bf16.mxu1 %vm1129_vm0, %v1128_v1  ;;  %988 = vmatpush3.bf16.msra.mxu1 %v1053_v46 }
 0x258   : > { %989 = vmatprep.subr.bf16.mxu1 %v1128_v1 }
 0x25b   : > { %990 = vmatpush3.bf16.msra.mxu1 %v1054_v47 }
 0x25c   : > { %991 = vmatprep.subr.bf16.mxu1 %v1128_v1 }
 0x25f   : > { %992 = vmatpush3.bf16.msra.mxu1 %v1055_v48 }
 0x260   : > { %993 = vmatprep.subr.bf16.mxu1 %v1128_v1 }
 0x263   : > { %994 = vmatpush3.bf16.msra.mxu1 %v1056_v49 }
 0x266   : > { %996 = vmatmul.mubr.msk.bf16.vlgmr.msra.gmra.mxu1 %vm457_vm1, %v1267_v5 }
 0x2da   : > { %v602_v51 = vpop.xlane.xlu0 %601 }
 0x2db   : > { %1062 = vrcp.f32 %v602_v51 }
 0x2de   : > { %v605_v52 = vpop.xlane.xlu1 %604 }
 0x2df   : > { %1064 = vrcp.f32 %v605_v52 }
 0x2e8   : > { %v1063_v55 = vpop.eup %1062 }
 0x2ec   : > { %v1065_v56 = vpop.eup %1064 }
 0x316   : > { %v662_v53 = vpop.f32.mrf.mxu1 }
 0x317   : > { %v669_v58 = vmul.f32 %v1063_v55, %v662_v53 }
 0x318   : > { %v979_v54 = vpop.f32.mrf.mxu1 }
 0x31a   : > { %v665_v57 = vpop.f32.mrf.mxu1 }
 0x31b   : > { %v670_v59 = vmul.f32 %v1065_v56, %v665_v57 }
 0x31c   : > { %v980_v60 = vpop.f32.mrf.mxu1 }
 0x31d   : > { %v679_v61 = vpack.c.bf16 %v670_v59, %v669_v58 }
 0x31f   : > { %984 = vmatmul.mubr.msk.bf16.vlgmr.msra.gmra.mxu0 %vm688_vm5, %v679_v61 }
 0x326   : > { %v791_v62 = vpop.f32.mrf.mxu1 }
 0x328   : > { %v997_v63 = vpop.f32.mrf.mxu1 }
 0x32a   : > { %v794_v0 = vpop.f32.mrf.mxu1 }
 0x32c   : > { %v998_v1 = vpop.f32.mrf.mxu1 }
 0x3df   : > { %v726_v2 = vpop.f32.mrf.mxu0 }
 0x3e0   : > { %v792_v4 = vadd.f32 %v791_v62, %v726_v2 }
 0x3e1   : > { %v985_v5 = vpop.f32.mrf.mxu0 }
 0x3e2   : > { %v805_v6 = vadd.f32 %v928_v3, %v792_v4 }
 0x3e3   : > { %v729_v7 = vpop.f32.mrf.mxu0 }
 0x3e4   : > { %807 = vst [vmem:[%s396_s16] sm:$0xff] %v805_v6  ;;  %v795_v8 = vadd.f32 %v794_v0, %v729_v7 }
 0x3e5   : > { %v986_v9 = vpop.f32.mrf.mxu0 }
 0x3e6   : > { %v806_v10 = vadd.f32 %v928_v3, %v795_v8 }
 0x3e8   : > { %808 = vst [vmem:[%s396_s16 + $0x8] sm:$0xff] %v806_v10 }
 0x3e9   : > { %1079 = shalt.err (!%p1076_p3)
}
 0x3ea   : > { %s1080_s12 = scalar_lea.hbm %s1342_s30, 256  ;;  %s1084_s25 = scalar_lea.hbm %s1395_s11, 512 }
 0x3eb   : > { %p1081_p4 = scmp.ne.s32.totalorder %s1342_s30, %s1080_s12  ;;  %p1085_p9 = scmp.lt.s32.totalorder %s1342_s30, %s1395_s11 }
 0x3ec   : > { %p1086_p10 = scmp.lt.s32.totalorder %s1084_s25, %s1080_s12 }
 0x3ed   : > { %p1082_p7 = pnand %p1081_p4, %p1232_p5 }
 0x3ee   : > { %p1087_p11 = por %p1086_p10, %p1085_p9 }
 0x3ef   : > { %p1083_p8 = pneg %p1082_p7 }
 0x3f1   : > { %p1088_p12 = pnand %p1087_p11, %p1083_p8 }
 0x3f3   : > { %1091 = shalt.err (!%p1088_p12)
}
 0x3f4   : > { %s1132_s0 = smov 128   ;;  %s1133_s13 = smov 8  }
 0x3f5   : > { %999 = dma.vmem_to_hbm [thread:$0]  (%p1232_p5), %s1337_s22, 256, %s1342_s30, %s1344_s14, %s1132_s0, %s1132_s0, %s1133_s13  }
 0x3f6 PF: > { %p1005_p13 = scmp.ge.s32.totalorder %s1126_s20, 2  ;;  %s838_s15 = sand.u32 1, %s1114_s17  }
 0x3f7   : > { %s839_s12 = scalar_lea.sflag [#allocation3], %s838_s15 }
 0x3f8   : > { %p1002_p0 = pnand %p1005_p13, %p1236_p6 }
 0x3fa   : > { %p1003_p1 = pneg %p1002_p0 }
 0x3fc   : > { %1109 = dma.done.wait (%p1003_p1), %s839_s12, 256  }
 0x3fd   : > { %1111 = vsyncadd (%p1003_p1), %s839_s12, 4294967040  ;;  %p21_p2 = scmp.ge.s32.totalorder %s1219_s23, 4   ;;  %s1400_s17 = smov %s1118_s18 }
 0x3fe   : > { %s1401_s18 = smov %s1122_s19  ;;  %s1402_s19 = smov %s1230_s26 }
 0x3ff   : > { %s1403_s20 = smov %s1219_s23  ;;  %23 = sbr.rel (!%p21_p2) target bundleno = 5 (0x5), region = 102 }
 0x404   :  { %844 = vsyncpa [#allocation3], 1 }
 0x405   :  { %846 = vsyncpa [#allocation3 + $0x1], 1 }

</bundles_post_ra>
